<compile_context>
chip_gen: v5e
topology: v5e:2x2
jax: 0.10.0
libtpu: 0.0.40
codegen_flags: <defaults>
</compile_context>

<pallas_src>
import math

import jax
import jax.numpy as jnp
from jax.experimental import pallas as pl
from jax.experimental.pallas import tpu as pltpu


def _tlu_kernel(x_ref, tau_ref, o_ref):
    # x_ref/o_ref: (ROW_TILE, HW_TILE) VMEM tiles; tau_ref: (ROW_TILE, 1),
    # broadcast across lanes by jnp broadcasting (VPU op, free for a
    # bandwidth-bound kernel).
    o_ref[...] = jnp.maximum(x_ref[...], tau_ref[...])


def _round_up(a: int, b: int) -> int:
    return (a + b - 1) // b * b


def tlu_forward(x, tau):
    """TLU forward: out = max(x, tau_c), tau broadcast per channel.

    x:   (N, C, *spatial) array.
    tau: (C, 1) array (per-channel threshold).
    """
    orig_shape = x.shape
    N, C = orig_shape[0], orig_shape[1]
    hw = int(math.prod(orig_shape[2:])) if len(orig_shape) > 2 else 1
    rows = N * C
    itemsize = jnp.dtype(x.dtype).itemsize

    # Dense (rows, hw) layout: channels packed onto sublanes, spatial on lanes.
    x2d = x.reshape(rows, hw)
    tau_rows = jnp.broadcast_to(
        tau.reshape(1, C, 1).astype(x.dtype), (N, C, 1)
    ).reshape(rows, 1)

    # --- tile selection -----------------------------------------------------
    # Sublane packing: 8 rows for f32, 16 for bf16, 32 for int8.
    sub = max(8, 32 // itemsize)
    # Lane-dense spatial tile (multiple of 128), capped for VMEM.
    HW_TILE = min(_round_up(hw, 128), 2048)
    # Row tile so each block stays <= ~2 MiB: with default double buffering
    # that is ~8 MiB live VMEM, well under the v7x 32 MiB scoped default.
    target_block_bytes = 2 * 1024 * 1024
    max_rows = max(sub, (target_block_bytes // (HW_TILE * itemsize)) // sub * sub)
    ROW_TILE = min(_round_up(rows, sub), max_rows)

    rows_p = _round_up(rows, ROW_TILE)
    hw_p = _round_up(hw, HW_TILE)

    needs_pad = (rows_p != rows) or (hw_p != hw)
    if needs_pad:
        # Padded region is max(0, 0) = 0 and sliced away afterwards.
        x2d = jnp.pad(x2d, ((0, rows_p - rows), (0, hw_p - hw)))
        tau_rows = jnp.pad(tau_rows, ((0, rows_p - rows), (0, 0)))

    grid = (rows_p // ROW_TILE, hw_p // HW_TILE)

    cost = pl.CostEstimate(
        flops=rows_p * hw_p,  # one compare/select per element
        transcendentals=0,
        bytes_accessed=2 * rows_p * hw_p * itemsize + rows_p * itemsize,
    )

    out2d = pl.pallas_call(
        _tlu_kernel,
        out_shape=jax.ShapeDtypeStruct((rows_p, hw_p), x.dtype),
        grid_spec=pltpu.PrefetchScalarGridSpec(
            num_scalar_prefetch=0,
            grid=grid,
            in_specs=[
                # Lane-dense activation tile.
                pl.BlockSpec((ROW_TILE, HW_TILE), lambda i, j: (i, j)),
                # Per-row tau; constant block index along j keeps it resident.
                pl.BlockSpec((ROW_TILE, 1), lambda i, j: (i, 0)),
            ],
            out_specs=pl.BlockSpec((ROW_TILE, HW_TILE), lambda i, j: (i, j)),
        ),
        compiler_params=pltpu.CompilerParams(
            dimension_semantics=("parallel", "parallel"),
        ),
        cost_estimate=cost,
    )(x2d, tau_rows)

    if needs_pad:
        out2d = out2d[:rows, :hw]
    return out2d.reshape(orig_shape)


if __name__ == "__main__":
    key = jax.random.PRNGKey(0)
    kx, kt = jax.random.split(key)

    N, C, H, W = 2, 4, 16, 16
    x = jax.random.normal(kx, (N, C, H, W), dtype=jnp.float32)
    # Module __init__ uses zeros; use deterministic non-trivial values so the
    # thresholding actually does something.
    tau = 0.1 * jax.random.normal(kt, (C, 1), dtype=jnp.float32)

    out = jax.block_until_ready(tlu_forward(x, tau))

    # Reference check (plain JAX, mirrors the PyTorch view/max/view)
    ref = jnp.maximum(x.reshape(N, C, -1), tau[None, :, :]).reshape(N, C, H, W)
    assert out.shape == x.shape and out.dtype == x.dtype
    assert jnp.allclose(out, ref), "mismatch vs reference"

    print("KERNEL_OK")
</pallas_src>

<mosaic_0001>
module attributes {stable_mosaic.version = 11 : i64} {
  func.func @_tlu_kernel(%arg0: i32, %arg1: i32, %arg2: memref<8x256xf32, #tpu.memory_space<vmem>>, %arg3: memref<8x1xf32, #tpu.memory_space<vmem>>, %arg4: memref<8x256xf32, #tpu.memory_space<vmem>>) attributes {dimension_semantics = [#tpu.dimension_semantics<parallel>, #tpu.dimension_semantics<parallel>], iteration_bounds = array<i64: 1, 1>, scalar_prefetch = 0 : i64, scratch_operands = 0 : i64, tpu.core_type = #tpu.core_type<tc>, window_params = [{transform_indices = @transform_0, window_bounds = array<i64: 8, 256>}, {transform_indices = @transform_1, window_bounds = array<i64: 8, 1>}, {transform_indices = @transform_2, window_bounds = array<i64: 8, 256>}]} {
    %c0 = arith.constant 0 : index
    %c0_0 = arith.constant 0 : index
    %0 = vector.load %arg2[%c0, %c0_0] : memref<8x256xf32, #tpu.memory_space<vmem>>, vector<8x256xf32>
    %c0_1 = arith.constant 0 : index
    %c0_2 = arith.constant 0 : index
    %1 = vector.load %arg3[%c0_1, %c0_2] : memref<8x1xf32, #tpu.memory_space<vmem>>, vector<8x1xf32>
    %2 = vector.broadcast %1 : vector<8x1xf32> to vector<8x256xf32>
    %3 = arith.maximumf %0, %2 : vector<8x256xf32>
    %c0_3 = arith.constant 0 : index
    %c0_4 = arith.constant 0 : index
    %4 = vector.load %arg4[%c0_3, %c0_4] : memref<8x256xf32, #tpu.memory_space<vmem>>, vector<8x256xf32>
    tpu.vector_store %arg4[%c0_3, %c0_4], %3 {strides = array<i32>} : memref<8x256xf32, #tpu.memory_space<vmem>>, vector<8x256xf32>,
    return
  }
  func.func @transform_0(%arg0: i32, %arg1: i32) -> (i32, i32) {
    %c0_i32 = arith.constant 0 : i32
    return %arg0, %arg1 : i32, i32
  }
  func.func @transform_1(%arg0: i32, %arg1: i32) -> (i32, i32) {
    %c0_i32 = arith.constant 0 : i32
    %c0_i32_0 = arith.constant 0 : i32
    return %arg0, %c0_i32 : i32, i32
  }
  func.func @transform_2(%arg0: i32, %arg1: i32) -> (i32, i32) {
    %c0_i32 = arith.constant 0 : i32
    return %arg0, %arg1 : i32, i32
  }
}

</mosaic_0001>

<bundles_post_ra>
// kernel: tpu_custom_call.1
= control target key start
LH: loop header
LB: loop body
LE: loop exit
PB: predicated region body
PF: predicated region fallthrough
CT: control target
= control target key end

     0   :  { %7 = vsyncpa [#allocation3], 0  ;;  %s138_s0 = inlined_call_operand.hbm [shape: f32[8,256], index: 0, kind: input, shape index: {}]   ;;  %s139_s1 = inlined_call_operand.vmem [shape: f32[8,1], index: 1, kind: input, shape index: {}]   ;;  %s140_s2 = inlined_call_operand.hbm [shape: f32[8,256], index: 2, kind: output, shape index: {}]  }
   0x1   :  { %8 = vsyncpa [#allocation4], 0  ;;  %s14_s11 = sshll.u32 %s138_s0, 4  ;;  %s111_s12 = smov [#allocation2]   ;;  %s15_s11 = int_to_ptr.hbm [resolvable:$true] %s14_s11 }
   0x2   :  { %s16_s13 = sshll.u32 %s111_s12, 4  ;;  %s17_s13 = int_to_ptr.vmem [resolvable:$true] %s16_s13 }
   0x3   :  { %19 = dma.hbm_to_vmem [thread:$0]  %s15_s11, 256, %s17_s13, [#allocation3]  }
   0x4   :  { %107 = dma.done.wait [#allocation3], 256  }
   0x5   :  { %108 = vsyncadd [#allocation3], 4294967040  ;;  %v112_v0 = vmov 0   ;;  %v28_v1 = vld [vmem:[%s139_s1] sm:$0xff]  ;;  %v27_v3 = vld [vmem:[#allocation2 + $0x8] sm:$0xff]  ;;  %s113_s16 = smov [#allocation5]  }
   0x6   :  { %58 = vset.pattern.permute.xlu0 %v112_v0  ;;  %v26_v2 = vld [vmem:[#allocation2] sm:$0xff]  ;;  %s43_s17 = sshll.u32 %s113_s16, 4  ;;  %s45_s19 = sshll.u32 %s140_s2, 4  ;;  %s44_s17 = int_to_ptr.vmem [resolvable:$true] %s43_s17  ;;  %s46_s19 = int_to_ptr.hbm [resolvable:$true] %s45_s19 }
   0x7   :  { %31 = vperm.xlu0 %58, %v28_v1  }
  0x79   :  { %v32_v4 = vpop.permute.xlu0 %31 }
  0x7a   :  { %v34_v5 = vmax.f32 %v26_v2, %v32_v4  ;;  %v35_v6 = vmax.f32 %v27_v3, %v32_v4 }
  0x7c   :  { %36 = vst [vmem:[#allocation5] sm:$0xff] %v34_v5 }
  0x7d   :  { %37 = vst [vmem:[#allocation5 + $0x8] sm:$0xff] %v35_v6 }
  0x7e   :  { %48 = dma.vmem_to_hbm [thread:$0]  %s44_s17, 256, %s46_s19, [#allocation4]  }
  0x7f   :  { %109 = dma.done.wait [#allocation4], 256  }
  0x80   :  { %110 = vsyncadd [#allocation4], 4294967040 }
  0x81   :  { %53 = vsyncpa [#allocation3], 1 }
  0x82   :  { %54 = vsyncpa [#allocation4], 1 }

</bundles_post_ra>
